<compile_context>
chip_gen: v5e
topology: v5e:2x2
jax: 0.10.0
libtpu: 0.0.40
codegen_flags: <defaults>
</compile_context>

<pallas_src>
import functools

import jax
import jax.numpy as jnp
from jax import lax
from jax.experimental import pallas as pl
from jax.experimental.pallas import tpu as pltpu


def _round_up(x, m):
    return (x + m - 1) // m * m


def _supcon_kernel(qf_ref, kf_ref, qlab_ref, klab_ref, a_ref, b_ref, out_ref,
                   *scratch, n_valid, n_pad, inv_temp, normalized):
    """One (row_block i, col_block j) step of the online-softmax SupCon loss.

    qf_ref  : VMEM [TM, Dp] bf16  anchor rows,   pre-scaled by sqrt(1/T)
    kf_ref  : VMEM [TN, Dp] bf16  contrast cols, pre-scaled by sqrt(1/T)
    qlab_ref: VMEM [TM, 1] int32  row labels (-1 for padding)
    klab_ref: VMEM [1, TN] int32  col labels (-1 for padding)
    a_ref   : VMEM [TM, 1] f32    loss_scale / positive_count (0 for pad / 0-positive rows)
    b_ref   : VMEM [TM, 1] f32    loss_scale                  (0 for pad / 0-positive rows)
    out_ref : VMEM [TM, 1] f32    per-row loss contribution (written at last j)
    scratch : (l_sc, ps_sc) if normalized else (m_sc, l_sc, ps_sc), VMEM [TM, 1] f32
    """
    if normalized:
        l_sc, ps_sc = scratch
    else:
        m_sc, l_sc, ps_sc = scratch

    i = pl.program_id(0)
    j = pl.program_id(1)
    tm = qf_ref.shape[0]
    tn = kf_ref.shape[0]
    neg_big = jnp.float32(-1e30)

    @pl.when(j == 0)
    def _init():
        if not normalized:
            m_sc[...] = jnp.full_like(m_sc, neg_big)
        l_sc[...] = jnp.zeros_like(l_sc)
        ps_sc[...] = jnp.zeros_like(ps_sc)

    # Similarity tile on the MXU: bf16 inputs, f32 accumulation, contraction on dim 1 of
    # both operands. 1/temperature is already folded into the operands (wrapper, f32).
    s = lax.dot_general(qf_ref[...], kf_ref[...],
                        dimension_numbers=(((1,), (1,)), ((), ())),
                        preferred_element_type=jnp.float32)            # [TM, TN]
    lab_eq = qlab_ref[...] == klab_ref[...]                            # [TM, TN]

    def _accumulate(s_m, pos_mask):
        # sum(mask * logits) accumulator (positive count is precomputed in the wrapper).
        ps_sc[...] += jnp.sum(jnp.where(pos_mask, s, 0.0), axis=1, keepdims=True)
        if normalized:
            # Static stabilizer: |logits| <= 1/T for L2-normalized features -> no
            # running max, no rescale, masked entries (-1e30) underflow exp to 0.
            l_sc[...] += jnp.sum(jnp.exp(s_m - inv_temp), axis=1, keepdims=True)
        else:
            blk_max = jnp.max(s_m, axis=1, keepdims=True)
            m_new = jnp.maximum(m_sc[...], blk_max)
            alpha = jnp.exp(m_sc[...] - m_new)
            p = jnp.exp(s_m - m_new)                                   # masked -> 0
            l_sc[...] = alpha * l_sc[...] + jnp.sum(p, axis=1, keepdims=True)
            m_sc[...] = m_new

    # Only tiles touching the diagonal (tm == tn  =>  i == j) or the padded last column
    # block need the self-contrast / padding masks. Interior tiles skip that work.
    needs_mask = i == j
    if n_pad > n_valid:                                                # static (trace-time)
        needs_mask = jnp.logical_or(needs_mask, j == pl.num_programs(1) - 1)

    @pl.when(needs_mask)
    def _edge_tile():
        gr = i * tm + lax.broadcasted_iota(jnp.int32, (tm, tn), 0)
        gc = j * tn + lax.broadcasted_iota(jnp.int32, (tm, tn), 1)
        denom_mask = jnp.logical_and(gr != gc, gc < n_valid)           # logits_mask
        _accumulate(jnp.where(denom_mask, s, neg_big),
                    jnp.logical_and(lab_eq, denom_mask))

    @pl.when(jnp.logical_not(needs_mask))
    def _interior_tile():
        _accumulate(s, lab_eq)

    @pl.when(j == pl.num_programs(1) - 1)
    def _finalize():
        m_fin = jnp.float32(inv_temp) if normalized else m_sc[...]
        log_denom = m_fin + jnp.log(l_sc[...])          # logsumexp over valid non-self cols
        # loss_row = loss_scale * (sum(mask*logits)/pc - log_denom)
        #          = ps * (loss_scale/pc) - log_denom * loss_scale ; both factors gated to
        #            0 in the wrapper for padded rows and rows with zero positives.
        out_ref[...] = ps_sc[...] * a_ref[...] - log_denom * b_ref[...]


def supcon_loss(features, labels=None, mask=None,
                temperature=0.07, contrast_mode="all", base_temperature=0.07,
                normalized=False):
    """JAX/Pallas equivalent of SupConLoss.forward (contrast_mode='all').

    Set normalized=True when features are L2-normalized along the feature dim (the
    standard SupCon usage) to enable the static-softmax-stabilizer fast path.
    """
    if features.ndim < 3:
        raise ValueError("`features` needs to be [bsz, n_views, ...]")
    if features.ndim > 3:
        features = features.reshape(features.shape[0], features.shape[1], -1)
    if contrast_mode != "all":
        # TODO(synk): contrast_mode='one' (single anchor view) not implemented.
        raise NotImplementedError("only contrast_mode='all' is implemented")
    if labels is not None and mask is not None:
        raise ValueError("Cannot define both `labels` and `mask`")
    if mask is not None:
        # TODO(synk): arbitrary explicit [bsz,bsz] masks (not expressible as label
        # equality) are not supported by the in-kernel mask construction.
        raise NotImplementedError("explicit `mask` path not implemented; pass `labels`")

    bsz, n_views, d = features.shape
    features = features.astype(jnp.float32)

    # Effective per-row labels of the contrast feature matrix (view-major).
    if labels is None:
        lab = jnp.arange(bsz, dtype=jnp.int32)          # SimCLR: "label = sample index"
    else:
        lab = labels.reshape(-1).astype(jnp.int32)
        if lab.shape[0] != bsz:
            raise ValueError("Num of labels does not match num of features")
    n = n_views * bsz
    lab_n = jnp.tile(lab, n_views)                      # [N]

    # contrast_feature = cat(unbind(features, dim=1), dim=0) -> [N, D]
    cf = jnp.transpose(features, (1, 0, 2)).reshape(n, d)

    inv_temp = 1.0 / float(temperature)
    loss_scale = -(float(temperature) / float(base_temperature)) / n   # mean over N rows folded in

    # Positives per anchor row (self excluded), computed once at O(bsz^2) wrapper cost.
    cnt_b = jnp.sum((lab[:, None] == lab[None, :]).astype(jnp.float32), axis=1)
    pc_n = jnp.tile(n_views * cnt_b - 1.0, n_views)                    # [N]
    has_pos = pc_n > 0.0
    # Exact f32 divide here (replaces the in-kernel approximate reciprocal); rows with
    # zero positives contribute 0 instead of the PyTorch NaN (documented difference).
    a_row = jnp.where(has_pos, loss_scale / jnp.maximum(pc_n, 1.0), 0.0).astype(jnp.float32)
    b_row = jnp.where(has_pos, jnp.float32(loss_scale), 0.0).astype(jnp.float32)

    # Lane-aligned padding; single tile granularity (tm == tn) so diagonal tiles are i == j.
    d_pad = _round_up(d, 128)
    tile = min(512, _round_up(n, 128))
    n_pad = _round_up(n, tile)
    g = n_pad // tile

    # Fold sqrt(1/T) into both operands in f32, then cast to bf16 and pad (no f32 pad buffer).
    cf_bf16 = (cf * jnp.float32(inv_temp ** 0.5)).astype(jnp.bfloat16)
    cf_pad = jnp.pad(cf_bf16, ((0, n_pad - n), (0, d_pad - d)))
    lab_pad = jnp.pad(lab_n, (0, n_pad - n), constant_values=-1)
    qlab = lab_pad.reshape(n_pad, 1)
    klab = lab_pad.reshape(1, n_pad)
    a_col = jnp.pad(a_row, (0, n_pad - n)).reshape(n_pad, 1)
    b_col = jnp.pad(b_row, (0, n_pad - n)).reshape(n_pad, 1)

    kernel = functools.partial(
        _supcon_kernel, n_valid=n, n_pad=n_pad, inv_temp=inv_temp,
        normalized=bool(normalized))
    n_scratch = 2 if normalized else 3                  # (m_sc,) l_sc, ps_sc

    per_row = pl.pallas_call(
        kernel,
        out_shape=jax.ShapeDtypeStruct((n_pad, 1), jnp.float32),
        grid_spec=pltpu.PrefetchScalarGridSpec(
            num_scalar_prefetch=0,
            grid=(g, g),
            in_specs=[
                pl.BlockSpec((tile, d_pad), lambda i, j: (i, 0)),   # anchor rows
                pl.BlockSpec((tile, d_pad), lambda i, j: (j, 0)),   # contrast cols
                pl.BlockSpec((tile, 1), lambda i, j: (i, 0)),       # row labels
                pl.BlockSpec((1, tile), lambda i, j: (0, j)),       # col labels
                pl.BlockSpec((tile, 1), lambda i, j: (i, 0)),       # loss_scale / pos_count
                pl.BlockSpec((tile, 1), lambda i, j: (i, 0)),       # loss_scale row gate
            ],
            out_specs=pl.BlockSpec((tile, 1), lambda i, j: (i, 0)),
            scratch_shapes=[pltpu.VMEM((tile, 1), jnp.float32)] * n_scratch,
        ),
        # TODO(synk): on v7x use pltpu.CORE_PARALLEL (or a pl.core_map split) on the row
        # axis to engage both TensorCores; "parallel" is kept here for portability.
        compiler_params=pltpu.CompilerParams(
            dimension_semantics=("parallel", "arbitrary"),
            vmem_limit_bytes=32 * 1024 * 1024),
    )(cf_pad, cf_pad, qlab, klab, a_col, b_col)

    return jnp.sum(per_row)


def _supcon_loss_ref(features, labels=None,
                     temperature=0.07, base_temperature=0.07):
    """Pure-JAX f32 reference mirroring the PyTorch forward (contrast_mode='all')."""
    bsz, n_views, d = features.shape
    features = features.astype(jnp.float32)
    if labels is None:
        base_mask = jnp.eye(bsz, dtype=jnp.float32)
    else:
        labels = labels.reshape(-1, 1)
        base_mask = (labels == labels.T).astype(jnp.float32)
    n = n_views * bsz
    cf = jnp.transpose(features, (1, 0, 2)).reshape(n, d)
    adc = (cf @ cf.T) / temperature
    logits = adc - jnp.max(adc, axis=1, keepdims=True)
    logits_mask = 1.0 - jnp.eye(n, dtype=jnp.float32)
    m = jnp.tile(base_mask, (n_views, n_views)) * logits_mask
    exp_logits = jnp.exp(logits) * logits_mask
    log_prob = logits - jnp.log(jnp.sum(exp_logits, axis=1, keepdims=True))
    mean_log_prob_pos = jnp.sum(m * log_prob, axis=1) / jnp.sum(m, axis=1)
    return jnp.mean(-(temperature / base_temperature) * mean_log_prob_pos)


if __name__ == "__main__":
    key = jax.random.PRNGKey(0)
    k_feat, k_lab = jax.random.split(key)

    bsz, n_views, hidden = 8, 2, 32
    features = jax.random.normal(k_feat, (bsz, n_views, hidden), dtype=jnp.float32)
    # L2-normalize (standard SupCon usage; enables the static-stabilizer fast path).
    features = features / jnp.linalg.norm(features, axis=-1, keepdims=True)
    labels = jax.random.randint(k_lab, (bsz,), 0, 3)

    # Supervised (labels) path, normalized fast path.
    loss_sup = jax.block_until_ready(supcon_loss(features, labels=labels, normalized=True))
    ref_sup = _supcon_loss_ref(features, labels=labels)
    assert jnp.allclose(loss_sup, ref_sup, rtol=5e-2, atol=5e-2), (loss_sup, ref_sup)

    # Supervised (labels) path, generic running-max path (unnormalized-safe).
    loss_sup_rm = jax.block_until_ready(supcon_loss(features, labels=labels, normalized=False))
    assert jnp.allclose(loss_sup_rm, ref_sup, rtol=5e-2, atol=5e-2), (loss_sup_rm, ref_sup)

    # Unsupervised (SimCLR) path, labels=None.
    loss_simclr = jax.block_until_ready(supcon_loss(features))
    ref_simclr = _supcon_loss_ref(features)
    assert jnp.allclose(loss_simclr, ref_simclr, rtol=5e-2, atol=5e-2), (loss_simclr, ref_simclr)

    print("KERNEL_OK")
</pallas_src>

<mosaic_0001>
module attributes {stable_mosaic.version = 11 : i64} {
  func.func @_supcon_kernel(%arg0: i32, %arg1: i32, %arg2: memref<128x128xbf16, #tpu.memory_space<vmem>>, %arg3: memref<128x128xbf16, #tpu.memory_space<vmem>>, %arg4: memref<128x1xi32, #tpu.memory_space<vmem>>, %arg5: memref<1x128xi32, #tpu.memory_space<vmem>>, %arg6: memref<128x1xf32, #tpu.memory_space<vmem>>, %arg7: memref<128x1xf32, #tpu.memory_space<vmem>>, %arg8: memref<128x1xf32, #tpu.memory_space<vmem>>, %arg9: memref<128x1xf32, #tpu.memory_space<vmem>>, %arg10: memref<128x1xf32, #tpu.memory_space<vmem>>) attributes {dimension_semantics = [#tpu.dimension_semantics<parallel>, #tpu.dimension_semantics<arbitrary>], iteration_bounds = array<i64: 1, 1>, scalar_prefetch = 0 : i64, scratch_operands = 2 : i64, tpu.core_type = #tpu.core_type<tc>, window_params = [{transform_indices = @transform_0, window_bounds = array<i64: 128, 128>}, {transform_indices = @transform_1, window_bounds = array<i64: 128, 128>}, {transform_indices = @transform_2, window_bounds = array<i64: 128, 1>}, {transform_indices = @transform_3, window_bounds = array<i64: 1, 128>}, {transform_indices = @transform_4, window_bounds = array<i64: 128, 1>}, {transform_indices = @transform_5, window_bounds = array<i64: 128, 1>}, {transform_indices = @transform_6, window_bounds = array<i64: 128, 1>}]} {
    %c0_i32 = arith.constant 0 : i32
    %0 = arith.cmpi eq, %arg1, %c0_i32 : i32
    %1 = arith.extui %0 : i1 to i32
    %c0_i32_0 = arith.constant 0 : i32
    %2 = arith.cmpi ne, %1, %c0_i32_0 : i32
    scf.if %2 {
      %cst_14 = arith.constant 0.000000e+00 : f32
      %22 = vector.broadcast %cst_14 : f32 to vector<128x1xf32>
      %c0_15 = arith.constant 0 : index
      %c0_16 = arith.constant 0 : index
      %23 = vector.load %arg9[%c0_15, %c0_16] : memref<128x1xf32, #tpu.memory_space<vmem>>, vector<128x1xf32>
      tpu.vector_store %arg9[%c0_15, %c0_16], %22 {strides = array<i32>} : memref<128x1xf32, #tpu.memory_space<vmem>>, vector<128x1xf32>,
      %cst_17 = arith.constant 0.000000e+00 : f32
      %24 = vector.broadcast %cst_17 : f32 to vector<128x1xf32>
      %c0_18 = arith.constant 0 : index
      %c0_19 = arith.constant 0 : index
      %25 = vector.load %arg10[%c0_18, %c0_19] : memref<128x1xf32, #tpu.memory_space<vmem>>, vector<128x1xf32>
      tpu.vector_store %arg10[%c0_18, %c0_19], %24 {strides = array<i32>} : memref<128x1xf32, #tpu.memory_space<vmem>>, vector<128x1xf32>,
    } else {
    }
    %c0 = arith.constant 0 : index
    %c0_1 = arith.constant 0 : index
    %3 = vector.load %arg2[%c0, %c0_1] : memref<128x128xbf16, #tpu.memory_space<vmem>>, vector<128x128xbf16>
    %c0_2 = arith.constant 0 : index
    %c0_3 = arith.constant 0 : index
    %4 = vector.load %arg3[%c0_2, %c0_3] : memref<128x128xbf16, #tpu.memory_space<vmem>>, vector<128x128xbf16>
    %cst = arith.constant dense<0.000000e+00> : vector<128x128xf32>
    %5 = tpu.matmul %3, %4, %cst {dimension_numbers = #tpu.dot_dimension_numbers<[1], [1], [0], [0], [0, 0, 1, 0], [], []>} : vector<128x128xbf16>, vector<128x128xbf16>, vector<128x128xf32> -> vector<128x128xf32>
    %c0_4 = arith.constant 0 : index
    %c0_5 = arith.constant 0 : index
    %6 = vector.load %arg4[%c0_4, %c0_5] : memref<128x1xi32, #tpu.memory_space<vmem>>, vector<128x1xi32>
    %c0_6 = arith.constant 0 : index
    %c0_7 = arith.constant 0 : index
    %7 = vector.load %arg5[%c0_6, %c0_7] : memref<1x128xi32, #tpu.memory_space<vmem>>, vector<1x128xi32>
    %8 = vector.broadcast %6 : vector<128x1xi32> to vector<128x128xi32>
    %9 = vector.broadcast %7 : vector<1x128xi32> to vector<128x128xi32>
    %10 = arith.cmpi eq, %8, %9 : vector<128x128xi32>
    %11 = arith.cmpi eq, %arg0, %arg1 : i32
    %c0_i32_8 = arith.constant 0 : i32
    %12 = arith.cmpi eq, %arg1, %c0_i32_8 : i32
    %13 = arith.ori %11, %12 : i1
    %14 = arith.extui %13 : i1 to i32
    %cst_9 = arith.constant -1.000000e+30 : f32
    %c0_i32_10 = arith.constant 0 : i32
    %15 = arith.cmpi ne, %14, %c0_i32_10 : i32
    scf.if %15 {
      %c128_i32 = arith.constant 128 : i32
      %22 = arith.muli %arg0, %c128_i32 : i32
      %23 = tpu.iota {dimensions = array<i32: 0>} : vector<128x128xi32>
      %24 = vector.broadcast %22 : i32 to vector<128x128xi32>
      %25 = arith.addi %24, %23 : vector<128x128xi32>
      %c128_i32_14 = arith.constant 128 : i32
      %26 = arith.muli %arg1, %c128_i32_14 : i32
      %27 = tpu.iota {dimensions = array<i32: 1>} : vector<128x128xi32>
      %28 = vector.broadcast %26 : i32 to vector<128x128xi32>
      %29 = arith.addi %28, %27 : vector<128x128xi32>
      %30 = arith.cmpi ne, %25, %29 : vector<128x128xi32>
      %c16_i32 = arith.constant 16 : i32
      %31 = vector.broadcast %c16_i32 : i32 to vector<128x128xi32>
      %32 = arith.cmpi slt, %29, %31 : vector<128x128xi32>
      %33 = arith.andi %30, %32 : vector<128x128xi1>
      %34 = vector.broadcast %cst_9 : f32 to vector<128x128xf32>
      %35 = arith.select %33, %5, %34 : vector<128x128xi1>, vector<128x128xf32>
      %36 = arith.andi %10, %33 : vector<128x128xi1>
      %c0_15 = arith.constant 0 : index
      %c0_16 = arith.constant 0 : index
      %37 = vector.load %arg10[%c0_15, %c0_16] : memref<128x1xf32, #tpu.memory_space<vmem>>, vector<128x1xf32>
      %cst_17 = arith.constant 0.000000e+00 : f32
      %38 = vector.broadcast %cst_17 : f32 to vector<128x128xf32>
      %39 = arith.select %36, %5, %38 : vector<128x128xi1>, vector<128x128xf32>
      %cst_18 = arith.constant dense<0.000000e+00> : vector<128xf32>
      %40 = vector.multi_reduction <add>, %39, %cst_18 [1] : vector<128x128xf32> to vector<128xf32>
      %41 = vector.shape_cast %40 : vector<128xf32> to vector<128x1xf32>
      %42 = arith.addf %37, %41 : vector<128x1xf32>
      %c0_19 = arith.constant 0 : index
      %c0_20 = arith.constant 0 : index
      %43 = vector.load %arg10[%c0_19, %c0_20] : memref<128x1xf32, #tpu.memory_space<vmem>>, vector<128x1xf32>
      tpu.vector_store %arg10[%c0_19, %c0_20], %42 {strides = array<i32>} : memref<128x1xf32, #tpu.memory_space<vmem>>, vector<128x1xf32>,
      %c0_21 = arith.constant 0 : index
      %c0_22 = arith.constant 0 : index
      %44 = vector.load %arg9[%c0_21, %c0_22] : memref<128x1xf32, #tpu.memory_space<vmem>>, vector<128x1xf32>
      %cst_23 = arith.constant 14.2857141 : f32
      %45 = vector.broadcast %cst_23 : f32 to vector<128x128xf32>
      %46 = arith.subf %35, %45 : vector<128x128xf32>
      %47 = math.exp %46 : vector<128x128xf32>
      %cst_24 = arith.constant dense<0.000000e+00> : vector<128xf32>
      %48 = vector.multi_reduction <add>, %47, %cst_24 [1] : vector<128x128xf32> to vector<128xf32>
      %49 = vector.shape_cast %48 : vector<128xf32> to vector<128x1xf32>
      %50 = arith.addf %44, %49 : vector<128x1xf32>
      %c0_25 = arith.constant 0 : index
      %c0_26 = arith.constant 0 : index
      %51 = vector.load %arg9[%c0_25, %c0_26] : memref<128x1xf32, #tpu.memory_space<vmem>>, vector<128x1xf32>
      tpu.vector_store %arg9[%c0_25, %c0_26], %50 {strides = array<i32>} : memref<128x1xf32, #tpu.memory_space<vmem>>, vector<128x1xf32>,
    } else {
    }
    %true = arith.constant true
    %16 = arith.xori %13, %true : i1
    %17 = arith.extui %16 : i1 to i32
    %c0_i32_11 = arith.constant 0 : i32
    %18 = arith.cmpi ne, %17, %c0_i32_11 : i32
    scf.if %18 {
      %c0_14 = arith.constant 0 : index
      %c0_15 = arith.constant 0 : index
      %22 = vector.load %arg10[%c0_14, %c0_15] : memref<128x1xf32, #tpu.memory_space<vmem>>, vector<128x1xf32>
      %cst_16 = arith.constant 0.000000e+00 : f32
      %23 = vector.broadcast %cst_16 : f32 to vector<128x128xf32>
      %24 = arith.select %10, %5, %23 : vector<128x128xi1>, vector<128x128xf32>
      %cst_17 = arith.constant dense<0.000000e+00> : vector<128xf32>
      %25 = vector.multi_reduction <add>, %24, %cst_17 [1] : vector<128x128xf32> to vector<128xf32>
      %26 = vector.shape_cast %25 : vector<128xf32> to vector<128x1xf32>
      %27 = arith.addf %22, %26 : vector<128x1xf32>
      %c0_18 = arith.constant 0 : index
      %c0_19 = arith.constant 0 : index
      %28 = vector.load %arg10[%c0_18, %c0_19] : memref<128x1xf32, #tpu.memory_space<vmem>>, vector<128x1xf32>
      tpu.vector_store %arg10[%c0_18, %c0_19], %27 {strides = array<i32>} : memref<128x1xf32, #tpu.memory_space<vmem>>, vector<128x1xf32>,
      %c0_20 = arith.constant 0 : index
      %c0_21 = arith.constant 0 : index
      %29 = vector.load %arg9[%c0_20, %c0_21] : memref<128x1xf32, #tpu.memory_space<vmem>>, vector<128x1xf32>
      %cst_22 = arith.constant 14.2857141 : f32
      %30 = vector.broadcast %cst_22 : f32 to vector<128x128xf32>
      %31 = arith.subf %5, %30 : vector<128x128xf32>
      %32 = math.exp %31 : vector<128x128xf32>
      %cst_23 = arith.constant dense<0.000000e+00> : vector<128xf32>
      %33 = vector.multi_reduction <add>, %32, %cst_23 [1] : vector<128x128xf32> to vector<128xf32>
      %34 = vector.shape_cast %33 : vector<128xf32> to vector<128x1xf32>
      %35 = arith.addf %29, %34 : vector<128x1xf32>
      %c0_24 = arith.constant 0 : index
      %c0_25 = arith.constant 0 : index
      %36 = vector.load %arg9[%c0_24, %c0_25] : memref<128x1xf32, #tpu.memory_space<vmem>>, vector<128x1xf32>
      tpu.vector_store %arg9[%c0_24, %c0_25], %35 {strides = array<i32>} : memref<128x1xf32, #tpu.memory_space<vmem>>, vector<128x1xf32>,
    } else {
    }
    %c0_i32_12 = arith.constant 0 : i32
    %19 = arith.cmpi eq, %arg1, %c0_i32_12 : i32
    %20 = arith.extui %19 : i1 to i32
    %c0_i32_13 = arith.constant 0 : i32
    %21 = arith.cmpi ne, %20, %c0_i32_13 : i32
    scf.if %21 {
      %c0_14 = arith.constant 0 : index
      %c0_15 = arith.constant 0 : index
      %22 = vector.load %arg9[%c0_14, %c0_15] : memref<128x1xf32, #tpu.memory_space<vmem>>, vector<128x1xf32>
      %23 = math.log %22 : vector<128x1xf32>
      %cst_16 = arith.constant 14.2857141 : f32
      %24 = vector.broadcast %cst_16 : f32 to vector<128x1xf32>
      %25 = arith.addf %24, %23 : vector<128x1xf32>
      %c0_17 = arith.constant 0 : index
      %c0_18 = arith.constant 0 : index
      %26 = vector.load %arg10[%c0_17, %c0_18] : memref<128x1xf32, #tpu.memory_space<vmem>>, vector<128x1xf32>
      %c0_19 = arith.constant 0 : index
      %c0_20 = arith.constant 0 : index
      %27 = vector.load %arg6[%c0_19, %c0_20] : memref<128x1xf32, #tpu.memory_space<vmem>>, vector<128x1xf32>
      %28 = arith.mulf %26, %27 : vector<128x1xf32>
      %c0_21 = arith.constant 0 : index
      %c0_22 = arith.constant 0 : index
      %29 = vector.load %arg7[%c0_21, %c0_22] : memref<128x1xf32, #tpu.memory_space<vmem>>, vector<128x1xf32>
      %30 = arith.mulf %25, %29 : vector<128x1xf32>
      %31 = arith.subf %28, %30 : vector<128x1xf32>
      %c0_23 = arith.constant 0 : index
      %c0_24 = arith.constant 0 : index
      %32 = vector.load %arg8[%c0_23, %c0_24] : memref<128x1xf32, #tpu.memory_space<vmem>>, vector<128x1xf32>
      tpu.vector_store %arg8[%c0_23, %c0_24], %31 {strides = array<i32>} : memref<128x1xf32, #tpu.memory_space<vmem>>, vector<128x1xf32>,
    } else {
    }
    return
  }
  func.func @transform_0(%arg0: i32, %arg1: i32) -> (i32, i32) {
    %c0_i32 = arith.constant 0 : i32
    %c0_i32_0 = arith.constant 0 : i32
    return %arg0, %c0_i32 : i32, i32
  }
  func.func @transform_1(%arg0: i32, %arg1: i32) -> (i32, i32) {
    %c0_i32 = arith.constant 0 : i32
    %c0_i32_0 = arith.constant 0 : i32
    return %arg1, %c0_i32 : i32, i32
  }
  func.func @transform_2(%arg0: i32, %arg1: i32) -> (i32, i32) {
    %c0_i32 = arith.constant 0 : i32
    %c0_i32_0 = arith.constant 0 : i32
    return %arg0, %c0_i32 : i32, i32
  }
  func.func @transform_3(%arg0: i32, %arg1: i32) -> (i32, i32) {
    %c0_i32 = arith.constant 0 : i32
    %c0_i32_0 = arith.constant 0 : i32
    return %c0_i32, %arg1 : i32, i32
  }
  func.func @transform_4(%arg0: i32, %arg1: i32) -> (i32, i32) {
    %c0_i32 = arith.constant 0 : i32
    %c0_i32_0 = arith.constant 0 : i32
    return %arg0, %c0_i32 : i32, i32
  }
  func.func @transform_5(%arg0: i32, %arg1: i32) -> (i32, i32) {
    %c0_i32 = arith.constant 0 : i32
    %c0_i32_0 = arith.constant 0 : i32
    return %arg0, %c0_i32 : i32, i32
  }
  func.func @transform_6(%arg0: i32, %arg1: i32) -> (i32, i32) {
    %c0_i32 = arith.constant 0 : i32
    %c0_i32_0 = arith.constant 0 : i32
    return %arg0, %c0_i32 : i32, i32
  }
}

</mosaic_0001>

<bundles_post_ra>
// kernel: tpu_custom_call.1
= control target key start
LH: loop header
LB: loop body
LE: loop exit
PB: predicated region body
PF: predicated region fallthrough
CT: control target
= control target key end

     0   :  { %v1272_v1 = vmov 0   ;;  %v325_v33 = vlaneseq  ;;  %s1910_s1 = inlined_call_operand.vmem [shape: bf16[128,128], index: 1, kind: input, shape index: {}]   ;;  %s1911_s2 = inlined_call_operand.vmem [shape: s32[128,1], index: 2, kind: input, shape index: {}]   ;;  %s1912_s3 = inlined_call_operand.vmem [shape: s32[1,128], index: 3, kind: input, shape index: {}]   ;;  %s1913_s0 = inlined_call_operand.vmem [shape: bf16[128,128], index: 0, kind: input, shape index: {}]   ;;  %s1914_s5 = inlined_call_operand.vmem [shape: f32[128,1], index: 5, kind: input, shape index: {}]   ;;  %s1915_s4 = inlined_call_operand.vmem [shape: f32[128,1], index: 4, kind: input, shape index: {}]   ;;  %s1916_s6 = inlined_call_operand.vmem [shape: f32[128,1], index: 6, kind: output, shape index: {}]  }
   0x1   :  { %v1177_v0 = vld [vmem:[%s1910_s1 + $0x38] sm:$0xff]  ;;  %1204 = vset.pattern.permute.xlu0 %v1272_v1  ;;  %1206 = vset.pattern.permute.xlu2 %v1272_v1  ;;  %v237_v2 = vld [vmem:[%s1911_s2] sm:$0xff]  ;;  %v1176_v3 = vld [vmem:[%s1910_s1 + $0x30] sm:$0xff] }
   0x2   :  { %1205 = vset.pattern.permute.xlu1 %v1272_v1  ;;  %188 = vmatpush.bf16.xpose.msra.mxu0 %v1177_v0  ;;  %v238_v4 = vld [vmem:[%s1911_s2 + $0x8] sm:$0xff]  ;;  %v243_v6 = vld [vmem:[%s1911_s2 + $0x30] sm:$0xff]  ;;  %v241_v7 = vld [vmem:[%s1911_s2 + $0x20] sm:$0xff]  ;;  %v1405_v34 = vshrl.u32 %v325_v33, 7  ;;  %v1408_v36 = vand.u32 127, %v325_v33 }
   0x3   :  { %1178 = vmatpush.bf16.xpose.msra.mxu1 %v1177_v0  ;;  %1179 = vmatpush.bf16.xpose.msra.mxu2 %v1177_v0  ;;  %v1175_v5 = vld [vmem:[%s1910_s1 + $0x28] sm:$0xff]  ;;  %v1174_v8 = vld [vmem:[%s1910_s1 + $0x20] sm:$0xff]  ;;  %v239_v9 = vld [vmem:[%s1911_s2 + $0x10] sm:$0xff] }
   0x4   :  { %1180 = vmatpush.bf16.xpose.msra.mxu3 %v1177_v0  ;;  %255 = vperm.xlu0 %1204, %v237_v2   ;;  %v246_v10 = vld [vmem:[%s1911_s2 + $0x48] sm:$0xff]  ;;  %v1173_v12 = vld [vmem:[%s1910_s1 + $0x18] sm:$0xff]  ;;  %v249_v14 = vld [vmem:[%s1911_s2 + $0x60] sm:$0xff]  ;;  %v341_v35 = vadd.s32 120, %v1405_v34  ;;  %vm380_vm1 = vcmp.lt.s32.totalorder %v1408_v36, 16  ;;  %vm364_vm3 = vcmp.ne.s32.totalorder %v1405_v34, %v1408_v36  ;;  %v330_v42 = vadd.s32 32, %v1405_v34 }
   0x5   :  { %267 = vperm.xlu2 %1206, %v241_v7   ;;  %v242_v11 = vld [vmem:[%s1911_s2 + $0x28] sm:$0xff]  ;;  %261 = vperm.xlu1 %1205, %v239_v9   ;;  %v240_v13 = vld [vmem:[%s1911_s2 + $0x18] sm:$0xff]  ;;  %v245_v15 = vld [vmem:[%s1911_s2 + $0x40] sm:$0xff]  ;;  %v334_v45 = vadd.s32 64, %v1405_v34  ;;  %v331_v53 = vadd.s32 40, %v1405_v34  ;;  %v327_v56 = vadd.s32 8, %v1405_v34 }
   0x6   :  { %v1172_v16 = vld [vmem:[%s1910_s1 + $0x10] sm:$0xff]  ;;  %v244_v17 = vld [vmem:[%s1911_s2 + $0x38] sm:$0xff]  ;;  %v1171_v20 = vld [vmem:[%s1910_s1 + $0x8] sm:$0xff]  ;;  %vm379_vm0 = vcmp.ne.s32.totalorder %v341_v35, %v1408_v36  ;;  %vm368_vm6 = vcmp.ne.s32.totalorder %v330_v42, %v1408_v36  ;;  %v339_v35 = vadd.s32 104, %v1405_v34 }
   0x7   :  { %v252_v18 = vld [vmem:[%s1911_s2 + $0x78] sm:$0xff]  ;;  %v247_v21 = vld [vmem:[%s1911_s2 + $0x50] sm:$0xff]  ;;  %v1170_v23 = vld [vmem:[%s1910_s1] sm:$0xff]  ;;  %vm372_vm9 = vcmp.ne.s32.totalorder %v334_v45, %v1408_v36  ;;  %vm369_vm13 = vcmp.ne.s32.totalorder %v331_v53, %v1408_v36  ;;  %v340_v45 = vadd.s32 112, %v1405_v34 }
   0x8   :  { %v248_v19 = vld [vmem:[%s1911_s2 + $0x58] sm:$0xff]  ;;  %v251_v22 = vld [vmem:[%s1911_s2 + $0x70] sm:$0xff]  ;;  %v250_v24 = vld [vmem:[%s1911_s2 + $0x68] sm:$0xff] }
   0x9   :  { %v1162_v25 = vld [vmem:[%s1913_s0] sm:$0xff]  ;;  %v1164_v26 = vld [vmem:[%s1913_s0 + $0x10] sm:$0xff]  ;;  %v1163_v29 = vld [vmem:[%s1913_s0 + $0x8] sm:$0xff] }
   0xa   :  { %189 = vmatpush.bf16.xpose.msra.mxu0 %v1176_v3  ;;  %v1166_v27 = vld [vmem:[%s1913_s0 + $0x20] sm:$0xff]  ;;  %v1168_v28 = vld [vmem:[%s1913_s0 + $0x30] sm:$0xff]  ;;  %v1165_v30 = vld [vmem:[%s1913_s0 + $0x18] sm:$0xff] }
   0xb   :  { %1181 = vmatpush.bf16.xpose.msra.mxu1 %v1176_v3  ;;  %1182 = vmatpush.bf16.xpose.msra.mxu2 %v1176_v3  ;;  %v1167_v31 = vld [vmem:[%s1913_s0 + $0x28] sm:$0xff]  ;;  %v1169_v32 = vld [vmem:[%s1913_s0 + $0x38] sm:$0xff]  ;;  %vm1414_vm2 = vmand %vm379_vm0, %vm380_vm1  ;;  %vm365_vm0 = vcmp.ne.s32.totalorder %v327_v56, %v1408_v36  ;;  %v329_v56 = vadd.s32 24, %v1405_v34 }
   0xc   :  { %1183 = vmatpush.bf16.xpose.msra.mxu3 %v1176_v3  ;;  %258 = vperm.xlu0 %1204, %v238_v4   ;;  %v1423_v40 = vld [vmem:[%s1912_s3] ss:$0 sm:$0xff]  ;;  %vm1431_vm5 = vmand %vm364_vm3, %vm380_vm1  ;;  %v335_v3 = vadd.s32 72, %v1405_v34 }
   0xd   :  { %270 = vperm.xlu2 %1206, %v242_v11   ;;  %264 = vperm.xlu1 %1205, %v240_v13   ;;  %vm1443_vm8 = vmand %vm368_vm6, %vm380_vm1  ;;  %v328_v13 = vadd.s32 16, %v1405_v34 }
   0xe   :  { %vm389_vm11 = vmand %vm372_vm9, %vm380_vm1 }
   0xf   :  { %vm1464_vm3 = vmand %vm369_vm13, %vm380_vm1  ;;  %vm366_vm13 = vcmp.ne.s32.totalorder %v328_v13, %v1408_v36 }
  0x10   :  { %vm1477_vm6 = vmand %vm365_vm0, %vm380_vm1 }
  0x12   :  { %190 = vmatpush.bf16.xpose.msra.mxu0 %v1175_v5 }
  0x13   :  { %1184 = vmatpush.bf16.xpose.msra.mxu1 %v1175_v5  ;;  %1185 = vmatpush.bf16.xpose.msra.mxu2 %v1175_v5 }
  0x14   :  { %1186 = vmatpush.bf16.xpose.msra.mxu3 %v1175_v5  ;;  %273 = vperm.xlu0 %1204, %v243_v6   ;;  %v338_v5 = vadd.s32 96, %v1405_v34 }
  0x15   :  { %279 = vperm.xlu2 %1206, %v245_v15   ;;  %276 = vperm.xlu1 %1205, %v244_v17  }
  0x16   :  { %vm376_vm9 = vcmp.ne.s32.totalorder %v338_v5, %v1408_v36  ;;  %v337_v5 = vadd.s32 88, %v1405_v34 }
  0x1a   :  { %191 = vmatpush.bf16.xpose.msra.mxu0 %v1174_v8 }
  0x1b   :  { %1187 = vmatpush.bf16.xpose.msra.mxu1 %v1174_v8  ;;  %1188 = vmatpush.bf16.xpose.msra.mxu2 %v1174_v8 }
  0x1c   :  { %1189 = vmatpush.bf16.xpose.msra.mxu3 %v1174_v8  ;;  %282 = vperm.xlu0 %1204, %v246_v10  }
  0x1d   :  { %288 = vperm.xlu2 %1206, %v248_v19   ;;  %285 = vperm.xlu1 %1205, %v247_v21  }
  0x22   :  { %192 = vmatpush.bf16.xpose.msra.mxu0 %v1173_v12 }
  0x23   :  { %1190 = vmatpush.bf16.xpose.msra.mxu1 %v1173_v12  ;;  %1191 = vmatpush.bf16.xpose.msra.mxu2 %v1173_v12 }
  0x24   :  { %1192 = vmatpush.bf16.xpose.msra.mxu3 %v1173_v12  ;;  %291 = vperm.xlu0 %1204, %v249_v14  }
  0x25   :  { %297 = vperm.xlu2 %1206, %v251_v22   ;;  %294 = vperm.xlu1 %1205, %v250_v24  }
  0x2a   :  { %193 = vmatpush.bf16.xpose.msra.mxu0 %v1172_v16 }
  0x2b   :  { %1193 = vmatpush.bf16.xpose.msra.mxu1 %v1172_v16  ;;  %1194 = vmatpush.bf16.xpose.msra.mxu2 %v1172_v16 }
  0x2c   :  { %1195 = vmatpush.bf16.xpose.msra.mxu3 %v1172_v16  ;;  %300 = vperm.xlu0 %1204, %v252_v18  }
  0x32   :  { %194 = vmatpush.bf16.xpose.msra.mxu0 %v1171_v20 }
  0x33   :  { %1196 = vmatpush.bf16.xpose.msra.mxu1 %v1171_v20  ;;  %1197 = vmatpush.bf16.xpose.msra.mxu2 %v1171_v20 }
  0x34   :  { %1198 = vmatpush.bf16.xpose.msra.mxu3 %v1171_v20 }
  0x3a   :  { %195 = vmatpush.bf16.xpose.msra.mxu0 %v1170_v23 }
  0x3b   :  { %1199 = vmatpush.bf16.xpose.msra.mxu1 %v1170_v23  ;;  %1200 = vmatpush.bf16.xpose.msra.mxu2 %v1170_v23 }
  0x3c   :  { %1201 = vmatpush.bf16.xpose.msra.mxu3 %v1170_v23 }
  0x41   :  { %196 = vmatmul.bf16.vlgmr.msra.gmra.mxu0 %v1162_v25 }
  0x42   :  { %206 = vmatmul.bf16.vlgmr.msra.gmra.mxu1 %v1164_v26  ;;  %216 = vmatmul.bf16.vlgmr.msra.gmra.mxu2 %v1166_v27  ;;  %v336_v27 = vadd.s32 80, %v1405_v34 }
  0x43   :  { %226 = vmatmul.bf16.vlgmr.msra.gmra.mxu3 %v1168_v28 }
  0x51   :  { %201 = vmatmul.bf16.gmra.mxu0 %v1163_v29  ;;  %v332_v29 = vadd.s32 48, %v1405_v34 }
  0x52   :  { %211 = vmatmul.bf16.gmra.mxu1 %v1165_v30  ;;  %221 = vmatmul.bf16.gmra.mxu2 %v1167_v31 }
  0x53   :  { %231 = vmatmul.bf16.gmra.mxu3 %v1169_v32 }
  0x5f   :  { %v268_v38 = vpop.permute.xlu2 %267 }
  0x60   :  { %vm307_vm12 = vcmp.eq.s32.totalorder %v268_v38, %v1423_v40 }
  0x61   :  { %vm417_vm15 = vmand %vm307_vm12, %vm1443_vm8 }
  0x62   :  { %vm1503_vm12 = vmand %vm376_vm9, %vm380_vm1 }
  0x67   :  { %v1425_v41 = vpop.permute.xlu2 %270 }
  0x6f   :  { %v280_v54 = vpop.permute.xlu2 %279 }
  0x70   :  { %vm311_vm10 = vcmp.eq.s32.totalorder %v280_v54, %v1423_v40 }
  0x71   :  { %vm421_vm14 = vmand %vm311_vm10, %vm389_vm11 }
  0x76   :  { %v256_v39 = vpop.permute.xlu0 %255 }
  0x77   :  { %vm303_vm4 = vcmp.eq.s32.totalorder %v256_v39, %v1423_v40  ;;  %v1439_v46 = vpop.permute.xlu1 %261 }
  0x78   :  { %vm413_vm7 = vmand %vm303_vm4, %vm1431_vm5  ;;  %vm305_vm0 = vcmp.eq.s32.totalorder %v1439_v46, %v1423_v40 }
  0x7e   :  { %v259_v44 = vpop.permute.xlu0 %258 }
  0x7f   :  { %v1468_v1 = vpop.permute.xlu1 %264  ;;  %vm304_vm4 = vcmp.eq.s32.totalorder %v259_v44, %v1423_v40 }
  0x86   :  { %v1456_v57 = vpop.permute.xlu0 %273 }
  0x87   :  { %v1507_v21 = vpop.permute.xlu1 %276 }
  0x8e   :  { %v283_v11 = vpop.permute.xlu0 %282 }
  0x8f   :  { %vm312_vm10 = vcmp.eq.s32.totalorder %v283_v11, %v1423_v40 }
  0xbe   :  { %v197_v47 = vpop.f32.mrf.mxu0 }
  0xbf   :  { %v207_v48 = vpop.f32.mrf.mxu1  ;;  %v445_v51 = vsel %vm413_vm7, %v197_v47, 0.0  ;;  %vm373_vm7 = vcmp.ne.s32.totalorder %v335_v3, %v1408_v36  ;;  %v397_v10 = vsel %vm1431_vm5, %v197_v47, -1e+30  ;;  %vm308_vm5 = vcmp.eq.s32.totalorder %v1425_v41, %v1423_v40  ;;  %v286_v41 = vpop.permute.xlu1 %285 }
  0xc0   :  { %v401_v50 = vsel %vm1443_vm8, %v207_v48, -1e+30  ;;  %461 = vadd.xlane.f32.xlu1 %v445_v51  ;;  %v449_v0 = vsel %vm417_vm15, %v207_v48, 0.0  ;;  %vm414_vm8 = vmand %vm304_vm4, %vm1477_vm6  ;;  %v1130_v16 = vadd.f32 -14.285714, %v397_v10  ;;  %vm313_vm9 = vcmp.eq.s32.totalorder %v286_v41, %v1423_v40 }
  0xc1   :  { %v1134_v52 = vadd.f32 -14.285714, %v401_v50  ;;  %vm418_vm15 = vmand %vm308_vm5, %vm1464_vm3  ;;  %v333_v48 = vadd.s32 56, %v1405_v34  ;;  %vm309_vm5 = vcmp.eq.s32.totalorder %v1456_v57, %v1423_v40 }
  0xc2   :  { %v558_v24 = vmul.f32 1.442695, %v1130_v16  ;;  %vm1522_vm4 = vmand %vm366_vm13, %vm380_vm1 }
  0xc3   :  { %v566_v55 = vmul.f32 1.442695, %v1134_v52 }
  0xc5   :  { %1208 = vpow2.f32 %v566_v55  ;;  %v217_v58 = vpop.f32.mrf.mxu2 }
  0xc6   :  { %v405_v59 = vsel %vm389_vm11, %v217_v58, -1e+30  ;;  %v453_v60 = vsel %vm421_vm14, %v217_v58, 0.0  ;;  %v199_v8 = vpop.f32.mrf.mxu0  ;;  %vm1491_vm11 = vmand %vm373_vm7, %vm380_vm1  ;;  %v1499_v19 = vpop.f32.mrf.mxu3  ;;  %vm374_vm7 = vcmp.ne.s32.totalorder %v336_v27, %v1408_v36 }
  0xc7   :  { %v209_v61 = vpop.f32.mrf.mxu1  ;;  %v1138_v62 = vadd.f32 -14.285714, %v405_v59  ;;  %477 = vadd.xlane.f32.xlu2 %v453_v60  ;;  %v446_v12 = vsel %vm414_vm8, %v199_v8, 0.0  ;;  %vm422_vm14 = vmand %vm312_vm10, %vm1491_vm11  ;;  %v409_v22 = vsel %vm1503_vm12, %v1499_v19, -1e+30  ;;  %vm370_vm8 = vcmp.ne.s32.totalorder %v332_v29, %v1408_v36 }
  0xc8   :  { %v402_v2 = vsel %vm1464_vm3, %v209_v61, -1e+30  ;;  %469 = vadd.xlane.f32.xlu1 %v449_v0  ;;  %v1142_v26 = vadd.f32 -14.285714, %v409_v22  ;;  %v450_v28 = vsel %vm418_vm15, %v209_v61, 0.0  ;;  %vm415_vm3 = vmand %vm305_vm0, %vm1522_vm4  ;;  %vm377_vm10 = vcmp.ne.s32.totalorder %v339_v35, %v1408_v36 }
  0xc9   :  { %v574_v4 = vmul.f32 1.442695, %v1138_v62  ;;  %v1135_v9 = vadd.f32 -14.285714, %v402_v2  ;;  %v398_v33 = vsel %vm1477_vm6, %v199_v8, -1e+30  ;;  %vm1542_vm6 = vmand %vm374_vm7, %vm380_vm1  ;;  %vm378_vm0 = vcmp.ne.s32.totalorder %v340_v45, %v1408_v36  ;;  %v292_v45 = vpop.permute.xlu0 %291 }
  0xca   :  { %v582_v32 = vmul.f32 1.442695, %v1142_v26  ;;  %v1131_v43 = vadd.f32 -14.285714, %v398_v33  ;;  %vm1553_vm13 = vmand %vm370_vm8, %vm380_vm1  ;;  %vm310_vm8 = vcmp.eq.s32.totalorder %v1507_v21, %v1423_v40  ;;  %v1273_v33 = vmov 0.0  }
  0xcb   :  { %v1209_v7 = vpop.eup %1208  ;;  %1210 = vpow2.f32 %v574_v4  ;;  %v568_v14 = vmul.f32 1.442695, %v1135_v9  ;;  %vm1563_vm15 = vmand %vm377_vm10, %vm380_vm1  ;;  %vm367_vm10 = vcmp.ne.s32.totalorder %v329_v56, %v1408_v36 }
  0xcc   :  { %598 = vadd.xlane.f32.xlu0 %v1209_v7  ;;  %v560_v51 = vmul.f32 1.442695, %v1131_v43  ;;  %vm1578_vm7 = vmand %vm378_vm0, %vm380_vm1  ;;  %vm375_vm0 = vcmp.ne.s32.totalorder %v337_v5, %v1408_v36 }
  0xcd   :  { %v1495_v17 = vpop.f32.mrf.mxu2  ;;  %1212 = vpow2.f32 %v568_v14 }
  0xce   :  { %v454_v23 = vsel %vm422_vm14, %v1495_v17, 0.0  ;;  %1214 = vpow2.f32 %v558_v24  ;;  %v202_v30 = vpop.f32.mrf.mxu0  ;;  %v1534_v38 = vpop.f32.mrf.mxu3  ;;  %vm423_vm14 = vmand %vm313_vm9, %vm1542_vm6  ;;  %v406_v60 = vsel %vm1491_vm11, %v1495_v17, -1e+30 }
  0xcf   :  { %463 = vadd.xlane.f32.xlu2 %v446_v12  ;;  %v447_v39 = vsel %vm415_vm3, %v202_v30, 0.0  ;;  %v1536_v42 = vpop.f32.mrf.mxu1  ;;  %1216 = vpow2.f32 %v582_v32  ;;  %v399_v50 = vsel %vm1522_vm4, %v202_v30, -1e+30  ;;  %v410_v54 = vsel %vm1563_vm15, %v1534_v38, -1e+30  ;;  %vm419_vm4 = vmand %vm309_vm5, %vm1553_vm13 }
  0xd0   :  { %vm371_vm3 = vcmp.ne.s32.totalorder %v333_v48, %v1408_v36  ;;  %v1132_v55 = vadd.f32 -14.285714, %v399_v50  ;;  %v451_v57 = vsel %vm419_vm4, %v1536_v42, 0.0  ;;  %1218 = vpow2.f32 %v560_v51  ;;  %v289_v48 = vpop.permute.xlu2 %288 }
  0xd1   :  { %v1211_v18 = vpop.eup %1210  ;;  %v1143_v61 = vadd.f32 -14.285714, %v410_v54  ;;  %vm1591_vm9 = vmand %vm371_vm3, %vm380_vm1  ;;  %v1139_v4 = vadd.f32 -14.285714, %v406_v60  ;;  %vm306_vm5 = vcmp.eq.s32.totalorder %v1468_v1, %v1423_v40  ;;  %v403_v1 = vsel %vm1553_vm13, %v1536_v42, -1e+30  ;;  %v301_v54 = vpop.permute.xlu0 %300 }
  0xd2   :  { %606 = vadd.xlane.f32.xlu1 %v1211_v18  ;;  %v562_v3 = vmul.f32 1.442695, %v1132_v55  ;;  %vm420_vm11 = vmand %vm310_vm8, %vm1591_vm9  ;;  %v1136_v18 = vadd.f32 -14.285714, %v403_v1  ;;  %vm315_vm13 = vcmp.eq.s32.totalorder %v292_v45, %v1423_v40  ;;  %vm314_vm4 = vcmp.eq.s32.totalorder %v289_v48, %v1423_v40  ;;  %v973_v45 = vld [vmem:[%s1915_s4 + $0x40] sm:$0xff] }
  0xd3   :  { %v1213_v31 = vpop.eup %1212  ;;  %v584_v6 = vmul.f32 1.442695, %v1143_v61  ;;  %v576_v12 = vmul.f32 1.442695, %v1139_v4  ;;  %vm1622_vm3 = vmand %vm375_vm0, %vm380_vm1 }
  0xd4   :  { %479 = vadd.xlane.f32.xlu0 %v454_v23  ;;  %v1215_v46 = vpop.eup %1214  ;;  %1220 = vpow2.f32 %v562_v3  ;;  %v570_v26 = vmul.f32 1.442695, %v1136_v18  ;;  %vm425_vm8 = vmand %vm315_vm13, %vm1503_vm12  ;;  %vm318_vm12 = vcmp.eq.s32.totalorder %v301_v54, %v1423_v40 }
  0xd5   :  { %v222_v47 = vpop.f32.mrf.mxu2  ;;  %v1217_v58 = vpop.eup %1216  ;;  %1222 = vpow2.f32 %v584_v6 }
  0xd6   :  { %v455_v53 = vsel %vm423_vm14, %v222_v47, 0.0  ;;  %v1587_v62 = vpop.f32.mrf.mxu3  ;;  %v407_v9 = vsel %vm1542_vm6, %v222_v47, -1e+30  ;;  %vm1608_vm14 = vmand %vm367_vm10, %vm380_vm1  ;;  %v1219_v34 = vpop.eup %1218  ;;  %1224 = vpow2.f32 %v576_v12  ;;  %vm27_vm1 = vcmask 7168  }
  0xd7   :  { %471 = vadd.xlane.f32.xlu2 %v450_v28  ;;  %v411_v0 = vsel %vm1578_vm7, %v1587_v62, -1e+30  ;;  %v214_v2 = vpop.f32.mrf.mxu1  ;;  %v204_v11 = vpop.f32.mrf.mxu0  ;;  %v1140_v13 = vadd.f32 -14.285714, %v407_v9  ;;  %vm416_vm6 = vmand %vm306_vm5, %vm1608_vm14  ;;  %44 = vst.msk [vmem:[#allocation3] sm:$0xff] %vm27_vm1, %v1273_v33 }
  0xd8   :  { %v1144_v7 = vadd.f32 -14.285714, %v411_v0  ;;  %v452_v8 = vsel %vm420_vm11, %v214_v2, 0.0  ;;  %v448_v15 = vsel %vm416_vm6, %v204_v11, 0.0  ;;  %v404_v24 = vsel %vm1591_vm9, %v214_v2, -1e+30  ;;  %vm424_vm9 = vmand %vm314_vm4, %vm1622_vm3  ;;  %v298_v20 = vpop.permute.xlu2 %297 }
  0xd9   :  { %v578_v23 = vmul.f32 1.442695, %v1140_v13  ;;  %v1137_v27 = vadd.f32 -14.285714, %v404_v24  ;;  %v400_v28 = vsel %vm1608_vm14, %v204_v11, -1e+30  ;;  %vm317_vm10 = vcmp.eq.s32.totalorder %v298_v20, %v1423_v40  ;;  %vm428_vm5 = vmand %vm318_vm12, %vm1414_vm2 }
  0xda   :  { %600 = vadd.xlane.f32.xlu1 %v1213_v31  ;;  %v586_v14 = vmul.f32 1.442695, %v1144_v7  ;;  %v1221_v22 = vpop.eup %1220  ;;  %v1133_v32 = vadd.f32 -14.285714, %v400_v28  ;;  %28 = vst.msk [vmem:[#allocation2] sm:$0xff] %vm27_vm1, %v1273_v33  ;;  %vm427_vm14 = vmand %vm317_vm10, %vm1578_vm7 }
  0xdb   :  { %v1223_v25 = vpop.eup %1222  ;;  %v572_v35 = vmul.f32 1.442695, %v1137_v27  ;;  %29 = vst.msk [vmem:[#allocation2 + $0x8] sm:$0xff] %vm27_vm1, %v1273_v33  ;;  %v969_v27 = vld [vmem:[%s1915_s4 + $0x20] sm:$0xff] }
  0xdc   :  { %465 = vadd.xlane.f32.xlu0 %v447_v39  ;;  %1226 = vpow2.f32 %v586_v14  ;;  %v1225_v29 = vpop.eup %1224  ;;  %30 = vst.msk [vmem:[#allocation2 + $0x10] sm:$0xff] %vm27_vm1, %v1273_v33  ;;  %v564_v41 = vmul.f32 1.442695, %v1133_v32 }
  0xdd   :  { %v1618_v16 = vpop.f32.mrf.mxu2  ;;  %1228 = vpow2.f32 %v578_v23  ;;  %31 = vst.msk [vmem:[#allocation2 + $0x18] sm:$0xff] %vm27_vm1, %v1273_v33 }
  0xde   :  { %v408_v21 = vsel %vm1622_vm3, %v1618_v16, -1e+30  ;;  %1230 = vpow2.f32 %v570_v26  ;;  %v234_v42 = vpop.f32.mrf.mxu3  ;;  %32 = vst.msk [vmem:[#allocation2 + $0x20] sm:$0xff] %vm27_vm1, %v1273_v33  ;;  %v456_v55 = vsel %vm424_vm9, %v1618_v16, 0.0 }
  0xdf   :  { %590 = vadd.xlane.f32.xlu2 %v1215_v46  ;;  %v1141_v36 = vadd.f32 -14.285714, %v408_v21  ;;  %v412_v43 = vsel %vm1414_vm2, %v234_v42, -1e+30  ;;  %33 = vst.msk [vmem:[#allocation2 + $0x28] sm:$0xff] %vm27_vm1, %v1273_v33 }
  0xe0   :  { %34 = vst.msk [vmem:[#allocation2 + $0x30] sm:$0xff] %vm27_vm1, %v1273_v33  ;;  %v1145_v46 = vadd.f32 -14.285714, %v412_v43 }
  0xe1   :  { %v580_v31 = vmul.f32 1.442695, %v1141_v36  ;;  %35 = vst.msk [vmem:[#allocation2 + $0x38] sm:$0xff] %vm27_vm1, %v1273_v33  ;;  %v526_v36 = vld [vmem:[#allocation2] sm:$0xff] }
  0xe2   :  { %481 = vadd.xlane.f32.xlu1 %v455_v53  ;;  %v1227_v30 = vpop.eup %1226  ;;  %36 = vst.msk [vmem:[#allocation2 + $0x40] sm:$0xff] %vm27_vm1, %v1273_v33  ;;  %v588_v50 = vmul.f32 1.442695, %v1145_v46  ;;  %v457_v53 = vsel %vm425_vm8, %v1499_v19, 0.0  ;;  %v295_v19 = vpop.permute.xlu1 %294 }
  0xe3   :  { %v1229_v39 = vpop.eup %1228  ;;  %1232 = vpow2.f32 %v580_v31  ;;  %37 = vst.msk [vmem:[#allocation2 + $0x48] sm:$0xff] %vm27_vm1, %v1273_v33  ;;  %vm316_vm11 = vcmp.eq.s32.totalorder %v295_v19, %v1423_v40  ;;  %v429_v40 = vld [vmem:[#allocation3] sm:$0xff] }
  0xe4   :  { %473 = vadd.xlane.f32.xlu0 %v451_v57  ;;  %1234 = vpow2.f32 %v572_v35  ;;  %v1231_v44 = vpop.eup %1230  ;;  %38 = vst.msk [vmem:[#allocation2 + $0x50] sm:$0xff] %vm27_vm1, %v1273_v33  ;;  %v460_v57 = vsel %vm428_vm5, %v234_v42, 0.0  ;;  %vm426_vm0 = vmand %vm316_vm11, %vm1563_vm15 }
  0xe5   :  { %1236 = vpow2.f32 %v564_v41  ;;  %39 = vst.msk [vmem:[#allocation2 + $0x58] sm:$0xff] %vm27_vm1, %v1273_v33  ;;  %v458_v37 = vsel %vm426_vm0, %v1534_v38, 0.0  ;;  %v530_v38 = vld [vmem:[#allocation2 + $0x20] sm:$0xff] }
  0xe6   :  { %40 = vst.msk [vmem:[#allocation2 + $0x60] sm:$0xff] %vm27_vm1, %v1273_v33  ;;  %1238 = vpow2.f32 %v588_v50  ;;  %v531_v16 = vld [vmem:[#allocation2 + $0x28] sm:$0xff] }
  0xe7   :  { %614 = vadd.xlane.f32.xlu2 %v1217_v58  ;;  %41 = vst.msk [vmem:[#allocation2 + $0x68] sm:$0xff] %vm27_vm1, %v1273_v33  ;;  %v459_v58 = vsel %vm427_vm14, %v1587_v62, 0.0 }
  0xe8   :  { %42 = vst.msk [vmem:[#allocation2 + $0x70] sm:$0xff] %vm27_vm1, %v1273_v33 }
  0xe9   :  { %v1233_v47 = vpop.eup %1232  ;;  %43 = vst.msk [vmem:[#allocation2 + $0x78] sm:$0xff] %vm27_vm1, %v1273_v33 }
  0xea   :  { %475 = vadd.xlane.f32.xlu1 %v452_v8  ;;  %v1235_v49 = vpop.eup %1234  ;;  %45 = vst.msk [vmem:[#allocation3 + $0x8] sm:$0xff] %vm27_vm1, %v1273_v33  ;;  %v534_v8 = vld [vmem:[#allocation2 + $0x40] sm:$0xff] }
  0xeb   :  { %v1237_v51 = vpop.eup %1236  ;;  %46 = vst.msk [vmem:[#allocation3 + $0x10] sm:$0xff] %vm27_vm1, %v1273_v33 }
  0xec   :  { %592 = vadd.xlane.f32.xlu0 %v1219_v34  ;;  %47 = vst.msk [vmem:[#allocation3 + $0x18] sm:$0xff] %vm27_vm1, %v1273_v33  ;;  %v1239_v56 = vpop.eup %1238 }
  0xed   :  { %48 = vst.msk [vmem:[#allocation3 + $0x20] sm:$0xff] %vm27_vm1, %v1273_v33  ;;  %v538_v54 = vld [vmem:[#allocation2 + $0x60] sm:$0xff] }
  0xee   :  { %49 = vst.msk [vmem:[#allocation3 + $0x28] sm:$0xff] %vm27_vm1, %v1273_v33 }
  0xef   :  { %467 = vadd.xlane.f32.xlu2 %v448_v15  ;;  %50 = vst.msk [vmem:[#allocation3 + $0x30] sm:$0xff] %vm27_vm1, %v1273_v33 }
  0xf0   :  { %51 = vst.msk [vmem:[#allocation3 + $0x38] sm:$0xff] %vm27_vm1, %v1273_v33 }
  0xf1   :  { %52 = vst.msk [vmem:[#allocation3 + $0x40] sm:$0xff] %vm27_vm1, %v1273_v33  ;;  %v430_v5 = vld [vmem:[#allocation3 + $0x8] sm:$0xff] }
  0xf2   :  { %594 = vadd.xlane.f32.xlu1 %v1221_v22  ;;  %53 = vst.msk [vmem:[#allocation3 + $0x48] sm:$0xff] %vm27_vm1, %v1273_v33  ;;  %v431_v18 = vld [vmem:[#allocation3 + $0x10] sm:$0xff] }
  0xf3   :  { %54 = vst.msk [vmem:[#allocation3 + $0x50] sm:$0xff] %vm27_vm1, %v1273_v33 }
  0xf4   :  { %616 = vadd.xlane.f32.xlu0 %v1223_v25  ;;  %55 = vst.msk [vmem:[#allocation3 + $0x58] sm:$0xff] %vm27_vm1, %v1273_v33  ;;  %v433_v61 = vld [vmem:[#allocation3 + $0x20] sm:$0xff] }
  0xf5   :  { %56 = vst.msk [vmem:[#allocation3 + $0x60] sm:$0xff] %vm27_vm1, %v1273_v33  ;;  %v434_v1 = vld [vmem:[#allocation3 + $0x28] sm:$0xff] }
  0xf6   :  { %57 = vst.msk [vmem:[#allocation3 + $0x68] sm:$0xff] %vm27_vm1, %v1273_v33  ;;  %v435_v42 = vld [vmem:[#allocation3 + $0x30] sm:$0xff] }
  0xf7   :  { %608 = vadd.xlane.f32.xlu2 %v1225_v29  ;;  %58 = vst.msk [vmem:[#allocation3 + $0x70] sm:$0xff] %vm27_vm1, %v1273_v33  ;;  %v1001_v29 = vld [vmem:[%s1914_s5 + $0x20] sm:$0xff] }
  0xf8   :  { %59 = vst.msk [vmem:[#allocation3 + $0x78] sm:$0xff] %vm27_vm1, %v1273_v33  ;;  %v437_v60 = vld [vmem:[#allocation3 + $0x40] sm:$0xff] }
  0xf9   :  { %v438_v10 = vld [vmem:[#allocation3 + $0x48] sm:$0xff] }
  0xfa   :  { %618 = vadd.xlane.f32.xlu1 %v1227_v30  ;;  %v439_v33 = vld [vmem:[#allocation3 + $0x50] sm:$0xff] }
  0xfc   :  { %610 = vadd.xlane.f32.xlu0 %v1229_v39 }
  0xff   :  { %602 = vadd.xlane.f32.xlu2 %v1231_v44 }
 0x102   :  { %612 = vadd.xlane.f32.xlu1 %v1233_v47 }
 0x104   :  { %604 = vadd.xlane.f32.xlu0 %v1235_v49 }
 0x107   :  { %596 = vadd.xlane.f32.xlu2 %v1237_v51  ;;  %v1005_v51 = vld [vmem:[%s1914_s5 + $0x40] sm:$0xff] }
 0x10a   :  { %485 = vadd.xlane.f32.xlu1 %v457_v53 }
 0x10c   :  { %483 = vadd.xlane.f32.xlu0 %v456_v55 }
 0x10f   :  { %620 = vadd.xlane.f32.xlu2 %v1239_v56 }
 0x112   :  { %491 = vadd.xlane.f32.xlu1 %v460_v57 }
 0x114   :  { %489 = vadd.xlane.f32.xlu0 %v459_v58  ;;  %v436_v58 = vld [vmem:[#allocation3 + $0x38] sm:$0xff] }
 0x117   :  { %487 = vadd.xlane.f32.xlu2 %v458_v37 }
 0x133   :  { %v462_v52 = vpop.xlane.xlu1 %461 }
 0x134   :  { %v493_v59 = vadd.f32 %v462_v52, %v429_v40 }
 0x136   :  { %510 = vst.msk [vmem:[#allocation3] sm:$0xff] %vm27_vm1, %v493_v59  ;;  %v527_v59 = vld [vmem:[#allocation2 + $0x8] sm:$0xff] }
 0x13a   :  { %v478_v62 = vpop.xlane.xlu2 %477 }
 0x13b   :  { %v501_v63 = vadd.f32 %v478_v62, %v437_v60  ;;  %v470_v0 = vpop.xlane.xlu1 %469  ;;  %v970_v62 = vld [vmem:[%s1915_s4 + $0x28] sm:$0xff] }
 0x13c   :  { %v497_v2 = vadd.f32 %v470_v0, %v433_v61 }
 0x13d   :  { %518 = vst.msk [vmem:[#allocation3 + $0x40] sm:$0xff] %vm27_vm1, %v501_v63 }
 0x13e   :  { %514 = vst.msk [vmem:[#allocation3 + $0x20] sm:$0xff] %vm27_vm1, %v497_v2 }
 0x13f   :  { %v599_v3 = vpop.xlane.xlu0 %598 }
 0x140   :  { %v626_v4 = vadd.f32 %v599_v3, %v530_v38  ;;  %v1002_v38 = vld [vmem:[%s1914_s5 + $0x28] sm:$0xff] }
 0x142   :  { %642 = vst.msk [vmem:[#allocation2 + $0x20] sm:$0xff] %vm27_vm1, %v626_v4  ;;  %v464_v6 = vpop.xlane.xlu2 %463  ;;  %v432_v4 = vld [vmem:[#allocation3 + $0x18] sm:$0xff] }
 0x143   :  { %v494_v7 = vadd.f32 %v464_v6, %v430_v5 }
 0x144   :  { %v957_v50 = vld [vmem:[#allocation3 + $0x40] sm:$0xff] }
 0x145   :  { %511 = vst.msk [vmem:[#allocation3 + $0x8] sm:$0xff] %vm27_vm1, %v494_v7  ;;  %v607_v9 = vpop.xlane.xlu1 %606  ;;  %v953_v28 = vld [vmem:[#allocation3 + $0x20] sm:$0xff]  ;;  %v989_v19 = vmul.f32 %v973_v45, %v957_v50  ;;  %v537_v50 = vld [vmem:[#allocation2 + $0x58] sm:$0xff] }
 0x146   :  { %v630_v34 = vadd.f32 %v607_v9, %v534_v8  ;;  %v985_v35 = vmul.f32 %v969_v27, %v953_v28 }
 0x147   :  { %v480_v11 = vpop.xlane.xlu0 %479 }
 0x148   :  { %646 = vst.msk [vmem:[#allocation2 + $0x40] sm:$0xff] %vm27_vm1, %v630_v34  ;;  %v502_v12 = vadd.f32 %v480_v11, %v438_v10  ;;  %v528_v34 = vld [vmem:[#allocation2 + $0x10] sm:$0xff]  ;;  %v965_v11 = vld [vmem:[%s1915_s4] sm:$0xff] }
 0x149   :  { %v889_v13 = vld [vmem:[#allocation2 + $0x20] sm:$0xff] }
 0x14a   :  { %1240 = vlog2.f32 %v889_v13  ;;  %519 = vst.msk [vmem:[#allocation3 + $0x48] sm:$0xff] %vm27_vm1, %v502_v12  ;;  %v472_v14 = vpop.xlane.xlu2 %471 }
 0x14b   :  { %v498_v15 = vadd.f32 %v472_v14, %v434_v1  ;;  %v949_v1 = vld [vmem:[#allocation3] sm:$0xff] }
 0x14c   :  { %v997_v14 = vld [vmem:[%s1914_s5] sm:$0xff]  ;;  %v950_v45 = vld [vmem:[#allocation3 + $0x8] sm:$0xff] }
 0x14d   :  { %515 = vst.msk [vmem:[#allocation3 + $0x28] sm:$0xff] %vm27_vm1, %v498_v15  ;;  %v601_v17 = vpop.xlane.xlu1 %600 }
 0x14e   :  { %v627_v21 = vadd.f32 %v601_v17, %v531_v16  ;;  %v539_v16 = vld [vmem:[#allocation2 + $0x68] sm:$0xff] }
 0x14f   :  { %v893_v22 = vld [vmem:[#allocation2 + $0x40] sm:$0xff]  ;;  %v466_v23 = vpop.xlane.xlu0 %465 }
 0x150   :  { %v1241_v24 = vpop.eup %1240  ;;  %1242 = vlog2.f32 %v893_v22  ;;  %643 = vst.msk [vmem:[#allocation2 + $0x28] sm:$0xff] %vm27_vm1, %v627_v21  ;;  %v495_v25 = vadd.f32 %v466_v23, %v431_v18  ;;  %v981_v22 = vmul.f32 %v965_v11, %v949_v1 }
 0x151   :  { %v910_v26 = vmul.f32 0.6931472, %v1241_v24 }
 0x152   :  { %512 = vst.msk [vmem:[#allocation3 + $0x10] sm:$0xff] %vm27_vm1, %v495_v25  ;;  %v591_v30 = vpop.xlane.xlu2 %590  ;;  %v535_v25 = vld [vmem:[#allocation2 + $0x48] sm:$0xff] }
 0x153   :  { %v937_v31 = vadd.f32 14.285714, %v910_v26  ;;  %v622_v32 = vadd.f32 %v591_v30, %v526_v36 }
 0x154   :  { %v954_v2 = vld [vmem:[#allocation3 + $0x28] sm:$0xff] }
 0x155   :  { %v1017_v39 = vmul.f32 %v1001_v29, %v937_v31  ;;  %638 = vst.msk [vmem:[#allocation2] sm:$0xff] %vm27_vm1, %v622_v32  ;;  %v482_v41 = vpop.xlane.xlu1 %481  ;;  %v986_v8 = vmul.f32 %v970_v62, %v954_v2  ;;  %v540_v29 = vld [vmem:[#allocation2 + $0x70] sm:$0xff]  ;;  %v529_v62 = vld [vmem:[#allocation2 + $0x18] sm:$0xff] }
 0x156   :  { %v1243_v43 = vpop.eup %1242  ;;  %v503_v44 = vadd.f32 %v482_v41, %v439_v33  ;;  %v536_v31 = vld [vmem:[#allocation2 + $0x50] sm:$0xff] }
 0x157   :  { %v1033_v46 = vsub.f32 %v985_v35, %v1017_v39  ;;  %v918_v47 = vmul.f32 0.6931472, %v1243_v43  ;;  %v890_v48 = vld [vmem:[#allocation2 + $0x28] sm:$0xff]  ;;  %v474_v49 = vpop.xlane.xlu0 %473 }
 0x158   :  { %1244 = vlog2.f32 %v890_v48  ;;  %520 = vst.msk [vmem:[#allocation3 + $0x50] sm:$0xff] %vm27_vm1, %v503_v44  ;;  %v499_v53 = vadd.f32 %v474_v49, %v435_v42  ;;  %v532_v42 = vld [vmem:[#allocation2 + $0x30] sm:$0xff]  ;;  %v966_v44 = vld [vmem:[%s1915_s4 + $0x8] sm:$0xff] }
 0x159   :  { %1050 = vst.msk [vmem:[%s1916_s6 + $0x20] sm:$0xff] %vm27_vm1, %v1033_v46  ;;  %v941_v55 = vadd.f32 14.285714, %v918_v47  ;;  %v998_v46 = vld [vmem:[%s1914_s5 + $0x8] sm:$0xff] }
 0x15a   :  { %516 = vst.msk [vmem:[#allocation3 + $0x30] sm:$0xff] %vm27_vm1, %v499_v53  ;;  %v615_v20 = vpop.xlane.xlu2 %614 }
 0x15b   :  { %v1021_v56 = vmul.f32 %v1005_v51, %v941_v55  ;;  %v634_v57 = vadd.f32 %v615_v20, %v538_v54  ;;  %v982_v54 = vmul.f32 %v966_v44, %v950_v45  ;;  %v444_v45 = vld [vmem:[#allocation3 + $0x78] sm:$0xff] }
 0x15c   :  { %v885_v37 = vld [vmem:[#allocation2] sm:$0xff] }
 0x15d   :  { %v1037_v40 = vsub.f32 %v989_v19, %v1021_v56  ;;  %1246 = vlog2.f32 %v885_v37  ;;  %650 = vst.msk [vmem:[#allocation2 + $0x60] sm:$0xff] %vm27_vm1, %v634_v57  ;;  %v476_v52 = vpop.xlane.xlu1 %475  ;;  %v533_v19 = vld [vmem:[#allocation2 + $0x38] sm:$0xff] }
 0x15e   :  { %v1245_v60 = vpop.eup %1244  ;;  %v500_v61 = vadd.f32 %v476_v52, %v436_v58  ;;  %v967_v58 = vld [vmem:[%s1915_s4 + $0x10] sm:$0xff] }
 0x15f   :  { %1054 = vst.msk [vmem:[%s1916_s6 + $0x40] sm:$0xff] %vm27_vm1, %v1037_v40  ;;  %v912_v63 = vmul.f32 0.6931472, %v1245_v60  ;;  %v593_v0 = vpop.xlane.xlu0 %592  ;;  %v999_v60 = vld [vmem:[%s1914_s5 + $0x10] sm:$0xff] }
 0x160   :  { %517 = vst.msk [vmem:[#allocation3 + $0x38] sm:$0xff] %vm27_vm1, %v500_v61  ;;  %v623_v3 = vadd.f32 %v593_v0, %v527_v59  ;;  %v951_v59 = vld [vmem:[#allocation3 + $0x10] sm:$0xff] }
 0x161   :  { %v938_v5 = vadd.f32 14.285714, %v912_v63 }
 0x162   :  { %639 = vst.msk [vmem:[#allocation2 + $0x8] sm:$0xff] %vm27_vm1, %v623_v3  ;;  %v468_v6 = vpop.xlane.xlu2 %467  ;;  %v983_v3 = vmul.f32 %v967_v58, %v951_v59 }
 0x163   :  { %v1247_v7 = vpop.eup %1246  ;;  %v1018_v9 = vmul.f32 %v1002_v38, %v938_v5  ;;  %v496_v10 = vadd.f32 %v468_v6, %v432_v4  ;;  %v441_v6 = vld [vmem:[#allocation3 + $0x60] sm:$0xff] }
 0x164   :  { %v902_v12 = vmul.f32 0.6931472, %v1247_v7  ;;  %v897_v51 = vld [vmem:[#allocation2 + $0x60] sm:$0xff]  ;;  %v974_v7 = vld [vmem:[%s1915_s4 + $0x48] sm:$0xff] }
 0x165   :  { %v1034_v13 = vsub.f32 %v986_v8, %v1018_v9  ;;  %513 = vst.msk [vmem:[#allocation3 + $0x18] sm:$0xff] %vm27_vm1, %v496_v10  ;;  %v595_v15 = vpop.xlane.xlu1 %594  ;;  %v958_v8 = vld [vmem:[#allocation3 + $0x48] sm:$0xff] }
 0x166   :  { %v933_v17 = vadd.f32 14.285714, %v902_v12  ;;  %v624_v18 = vadd.f32 %v595_v15, %v528_v34  ;;  %v1006_v12 = vld [vmem:[%s1914_s5 + $0x48] sm:$0xff] }
 0x167   :  { %1051 = vst.msk [vmem:[%s1916_s6 + $0x28] sm:$0xff] %vm27_vm1, %v1034_v13  ;;  %v617_v21 = vpop.xlane.xlu0 %616  ;;  %v440_v13 = vld [vmem:[#allocation3 + $0x58] sm:$0xff] }
 0x168   :  { %v1013_v23 = vmul.f32 %v997_v14, %v933_v17  ;;  %640 = vst.msk [vmem:[#allocation2 + $0x10] sm:$0xff] %vm27_vm1, %v624_v18  ;;  %v635_v24 = vadd.f32 %v617_v21, %v539_v16  ;;  %v990_v17 = vmul.f32 %v974_v7, %v958_v8 }
 0x169   :  { %v886_v36 = vld [vmem:[#allocation2 + $0x8] sm:$0xff] }
 0x16a   :  { %v1029_v26 = vsub.f32 %v981_v22, %v1013_v23  ;;  %1248 = vlog2.f32 %v886_v36  ;;  %651 = vst.msk [vmem:[#allocation2 + $0x68] sm:$0xff] %vm27_vm1, %v635_v24  ;;  %v609_v27 = vpop.xlane.xlu2 %608  ;;  %v541_v36 = vld [vmem:[#allocation2 + $0x78] sm:$0xff] }
 0x16b   :  { %v631_v28 = vadd.f32 %v609_v27, %v535_v25 }
 0x16c   :  { %1046 = vst.msk [vmem:[%s1916_s6] sm:$0xff] %vm27_vm1, %v1029_v26  ;;  %v975_v26 = vld [vmem:[%s1915_s4 + $0x50] sm:$0xff] }
 0x16d   :  { %647 = vst.msk [vmem:[#allocation2 + $0x48] sm:$0xff] %vm27_vm1, %v631_v28  ;;  %v619_v30 = vpop.xlane.xlu1 %618 }
 0x16e   :  { %v636_v32 = vadd.f32 %v619_v30, %v540_v29  ;;  %v959_v30 = vld [vmem:[#allocation3 + $0x50] sm:$0xff] }
 0x16f   :  { %v887_v33 = vld [vmem:[#allocation2 + $0x10] sm:$0xff]  ;;  %v611_v35 = vpop.xlane.xlu0 %610 }
 0x170   :  { %v1249_v39 = vpop.eup %1248  ;;  %1250 = vlog2.f32 %v887_v33  ;;  %652 = vst.msk [vmem:[#allocation2 + $0x70] sm:$0xff] %vm27_vm1, %v636_v32  ;;  %v632_v41 = vadd.f32 %v611_v35, %v536_v31  ;;  %v971_v31 = vld [vmem:[%s1915_s4 + $0x30] sm:$0xff] }
 0x171   :  { %v904_v43 = vmul.f32 0.6931472, %v1249_v39  ;;  %v898_v27 = vld [vmem:[#allocation2 + $0x68] sm:$0xff]  ;;  %v1007_v33 = vld [vmem:[%s1914_s5 + $0x50] sm:$0xff] }
 0x172   :  { %648 = vst.msk [vmem:[#allocation2 + $0x50] sm:$0xff] %vm27_vm1, %v632_v41  ;;  %v603_v47 = vpop.xlane.xlu2 %602  ;;  %v955_v41 = vld [vmem:[#allocation3 + $0x30] sm:$0xff] }
 0x173   :  { %v934_v48 = vadd.f32 14.285714, %v904_v43  ;;  %v628_v49 = vadd.f32 %v603_v47, %v532_v42  ;;  %v1009_v42 = vld [vmem:[%s1914_s5 + $0x60] sm:$0xff]  ;;  %v987_v58 = vmul.f32 %v971_v31, %v955_v41 }
 0x174   :  { %v894_v53 = vld [vmem:[#allocation2 + $0x48] sm:$0xff] }
 0x175   :  { %v1014_v55 = vmul.f32 %v998_v46, %v934_v48  ;;  %1252 = vlog2.f32 %v894_v53  ;;  %644 = vst.msk [vmem:[#allocation2 + $0x30] sm:$0xff] %vm27_vm1, %v628_v49  ;;  %v613_v20 = vpop.xlane.xlu1 %612  ;;  %v991_v49 = vmul.f32 %v975_v26, %v959_v30  ;;  %v977_v53 = vld [vmem:[%s1915_s4 + $0x60] sm:$0xff]  ;;  %v1000_v26 = vld [vmem:[%s1914_s5 + $0x18] sm:$0xff]  ;;  %v1011_v30 = vld [vmem:[%s1914_s5 + $0x70] sm:$0xff] }
 0x176   :  { %v1251_v56 = vpop.eup %1250  ;;  %v633_v57 = vadd.f32 %v613_v20, %v537_v50  ;;  %1254 = vlog2.f32 %v897_v51  ;;  %v1003_v51 = vld [vmem:[%s1914_s5 + $0x30] sm:$0xff] }
 0x177   :  { %v1030_v37 = vsub.f32 %v982_v54, %v1014_v55  ;;  %v906_v40 = vmul.f32 0.6931472, %v1251_v56  ;;  %v605_v52 = vpop.xlane.xlu0 %604  ;;  %v899_v15 = vld [vmem:[#allocation2 + $0x70] sm:$0xff] }
 0x178   :  { %649 = vst.msk [vmem:[#allocation2 + $0x58] sm:$0xff] %vm27_vm1, %v633_v57  ;;  %v629_v61 = vadd.f32 %v605_v52, %v533_v19  ;;  %v443_v55 = vld [vmem:[#allocation3 + $0x70] sm:$0xff] }
 0x179   :  { %1047 = vst.msk [vmem:[%s1916_s6 + $0x8] sm:$0xff] %vm27_vm1, %v1030_v37  ;;  %v935_v63 = vadd.f32 14.285714, %v906_v40  ;;  %v895_v0 = vld [vmem:[#allocation2 + $0x50] sm:$0xff]  ;;  %v972_v37 = vld [vmem:[%s1915_s4 + $0x38] sm:$0xff] }
 0x17a   :  { %1256 = vlog2.f32 %v895_v0  ;;  %645 = vst.msk [vmem:[#allocation2 + $0x38] sm:$0xff] %vm27_vm1, %v629_v61  ;;  %v597_v2 = vpop.xlane.xlu2 %596  ;;  %v956_v0 = vld [vmem:[#allocation3 + $0x38] sm:$0xff] }
 0x17b   :  { %v1253_v38 = vpop.eup %1252  ;;  %v1015_v4 = vmul.f32 %v999_v60, %v935_v63  ;;  %v625_v5 = vadd.f32 %v597_v2, %v529_v62  ;;  %v976_v60 = vld [vmem:[%s1915_s4 + $0x58] sm:$0xff] }
 0x17c   :  { %v920_v9 = vmul.f32 0.6931472, %v1253_v38  ;;  %v891_v10 = vld [vmem:[#allocation2 + $0x30] sm:$0xff]  ;;  %v1255_v34 = vpop.eup %1254  ;;  %v1008_v38 = vld [vmem:[%s1914_s5 + $0x58] sm:$0xff] }
 0x17d   :  { %v1031_v11 = vsub.f32 %v983_v3, %v1015_v4  ;;  %1258 = vlog2.f32 %v891_v10  ;;  %641 = vst.msk [vmem:[#allocation2 + $0x18] sm:$0xff] %vm27_vm1, %v625_v5  ;;  %v486_v1 = vpop.xlane.xlu1 %485  ;;  %v926_v23 = vmul.f32 0.6931472, %v1255_v34  ;;  %v442_v5 = vld [vmem:[#allocation3 + $0x68] sm:$0xff] }
 0x17e   :  { %v942_v14 = vadd.f32 14.285714, %v920_v9  ;;  %v505_v16 = vadd.f32 %v486_v1, %v441_v6 }
 0x17f   :  { %1048 = vst.msk [vmem:[%s1916_s6 + $0x10] sm:$0xff] %vm27_vm1, %v1031_v11  ;;  %v896_v18 = vld [vmem:[#allocation2 + $0x58] sm:$0xff]  ;;  %v484_v21 = vpop.xlane.xlu0 %483  ;;  %v945_v46 = vadd.f32 14.285714, %v926_v23 }
 0x180   :  { %v1257_v22 = vpop.eup %1256  ;;  %v1022_v24 = vmul.f32 %v1006_v12, %v942_v14  ;;  %1260 = vlog2.f32 %v896_v18  ;;  %522 = vst.msk [vmem:[#allocation3 + $0x60] sm:$0xff] %vm27_vm1, %v505_v16  ;;  %v504_v25 = vadd.f32 %v484_v21, %v440_v13  ;;  %v1004_v11 = vld [vmem:[%s1914_s5 + $0x38] sm:$0xff]  ;;  %v988_v18 = vmul.f32 %v972_v37, %v956_v0 }
 0x181   :  { %1262 = vlog2.f32 %v899_v15  ;;  %v922_v28 = vmul.f32 0.6931472, %v1257_v22  ;;  %v892_v29 = vld [vmem:[#allocation2 + $0x38] sm:$0xff]  ;;  %v1025_v63 = vmul.f32 %v1009_v42, %v945_v46  ;;  %v1010_v46 = vld [vmem:[%s1914_s5 + $0x68] sm:$0xff] }
 0x182   :  { %v1038_v32 = vsub.f32 %v990_v17, %v1022_v24  ;;  %1264 = vlog2.f32 %v892_v29  ;;  %521 = vst.msk [vmem:[#allocation3 + $0x58] sm:$0xff] %vm27_vm1, %v504_v25  ;;  %v621_v35 = vpop.xlane.xlu2 %620  ;;  %v968_v23 = vld [vmem:[%s1915_s4 + $0x18] sm:$0xff] }
 0x183   :  { %v1259_v39 = vpop.eup %1258  ;;  %v943_v43 = vadd.f32 14.285714, %v922_v28  ;;  %v637_v44 = vadd.f32 %v621_v35, %v541_v36  ;;  %1266 = vlog2.f32 %v898_v27  ;;  %v952_v24 = vld [vmem:[#allocation3 + $0x18] sm:$0xff] }
 0x184   :  { %1055 = vst.msk [vmem:[%s1916_s6 + $0x48] sm:$0xff] %vm27_vm1, %v1038_v32  ;;  %v914_v47 = vmul.f32 0.6931472, %v1259_v39  ;;  %v888_v48 = vld [vmem:[#allocation2 + $0x18] sm:$0xff]  ;;  %v979_v32 = vld [vmem:[%s1915_s4 + $0x70] sm:$0xff] }
 0x185   :  { %v1023_v50 = vmul.f32 %v1007_v33, %v943_v43  ;;  %1268 = vlog2.f32 %v888_v48  ;;  %653 = vst.msk [vmem:[#allocation2 + $0x78] sm:$0xff] %vm27_vm1, %v637_v44  ;;  %v492_v54 = vpop.xlane.xlu1 %491  ;;  %v984_v33 = vmul.f32 %v968_v23, %v952_v24 }
 0x186   :  { %v1261_v20 = vpop.eup %1260  ;;  %v939_v19 = vadd.f32 14.285714, %v914_v47  ;;  %v508_v56 = vadd.f32 %v492_v54, %v444_v45  ;;  %v978_v47 = vld [vmem:[%s1915_s4 + $0x68] sm:$0xff] }
 0x187   :  { %v1263_v57 = vpop.eup %1262  ;;  %v1039_v40 = vsub.f32 %v991_v49, %v1023_v50  ;;  %v924_v52 = vmul.f32 0.6931472, %v1261_v20  ;;  %v961_v59 = vld [vmem:[#allocation3 + $0x60] sm:$0xff]  ;;  %v490_v61 = vpop.xlane.xlu0 %489  ;;  %v980_v49 = vld [vmem:[%s1915_s4 + $0x78] sm:$0xff] }
 0x188   :  { %v1265_v62 = vpop.eup %1264  ;;  %v1019_v2 = vmul.f32 %v1003_v51, %v939_v19  ;;  %v993_v3 = vmul.f32 %v977_v53, %v961_v59  ;;  %525 = vst.msk [vmem:[#allocation3 + $0x78] sm:$0xff] %vm27_vm1, %v508_v56  ;;  %v507_v4 = vadd.f32 %v490_v61, %v443_v55  ;;  %v930_v10 = vmul.f32 0.6931472, %v1263_v57  ;;  %v1012_v51 = vld [vmem:[%s1914_s5 + $0x78] sm:$0xff] }
 0x189   :  { %1056 = vst.msk [vmem:[%s1916_s6 + $0x50] sm:$0xff] %vm27_vm1, %v1039_v40  ;;  %v944_v6 = vadd.f32 14.285714, %v924_v52  ;;  %v916_v7 = vmul.f32 0.6931472, %v1265_v62  ;;  %v960_v8 = vld [vmem:[#allocation3 + $0x58] sm:$0xff]  ;;  %v1267_v9 = vpop.eup %1266 }
 0x18a   :  { %v1035_v34 = vsub.f32 %v987_v58, %v1019_v2  ;;  %v1041_v12 = vsub.f32 %v993_v3, %v1025_v63  ;;  %v992_v1 = vmul.f32 %v976_v60, %v960_v8  ;;  %524 = vst.msk [vmem:[#allocation3 + $0x70] sm:$0xff] %vm27_vm1, %v507_v4  ;;  %v488_v13 = vpop.xlane.xlu2 %487  ;;  %v928_v25 = vmul.f32 0.6931472, %v1267_v9 }
 0x18b   :  { %v1269_v14 = vpop.eup %1268  ;;  %v1024_v15 = vmul.f32 %v1008_v38, %v944_v6  ;;  %v940_v16 = vadd.f32 14.285714, %v916_v7  ;;  %v506_v17 = vadd.f32 %v488_v13, %v442_v5  ;;  %v947_v28 = vadd.f32 14.285714, %v930_v10 }
 0x18c   :  { %1052 = vst.msk [vmem:[%s1916_s6 + $0x30] sm:$0xff] %vm27_vm1, %v1035_v34  ;;  %v908_v21 = vmul.f32 0.6931472, %v1269_v14  ;;  %v900_v22 = vld [vmem:[#allocation2 + $0x78] sm:$0xff]  ;;  %v946_v41 = vadd.f32 14.285714, %v928_v25 }
 0x18d   :  { %v1020_v36 = vmul.f32 %v1004_v11, %v940_v16  ;;  %1058 = vst.msk [vmem:[%s1916_s6 + $0x60] sm:$0xff] %vm27_vm1, %v1041_v12  ;;  %v1040_v27 = vsub.f32 %v992_v1, %v1024_v15  ;;  %1270 = vlog2.f32 %v900_v22  ;;  %v1027_v42 = vmul.f32 %v1011_v30, %v947_v28 }
 0x18e   :  { %v936_v29 = vadd.f32 14.285714, %v908_v21  ;;  %523 = vst.msk [vmem:[#allocation3 + $0x68] sm:$0xff] %vm27_vm1, %v506_v17  ;;  %v1026_v55 = vmul.f32 %v1010_v46, %v946_v41 }
 0x18f   :  { %v1036_v31 = vsub.f32 %v988_v18, %v1020_v36  ;;  %1057 = vst.msk [vmem:[%s1916_s6 + $0x58] sm:$0xff] %vm27_vm1, %v1040_v27  ;;  %v964_v53 = vld [vmem:[#allocation3 + $0x78] sm:$0xff] }
 0x190   :  { %v1016_v35 = vmul.f32 %v1000_v26, %v936_v29  ;;  %v996_v57 = vmul.f32 %v980_v49, %v964_v53 }
 0x191   :  { %1053 = vst.msk [vmem:[%s1916_s6 + $0x38] sm:$0xff] %vm27_vm1, %v1036_v31  ;;  %v963_v39 = vld [vmem:[#allocation3 + $0x70] sm:$0xff] }
 0x192   :  { %v1032_v43 = vsub.f32 %v984_v33, %v1016_v35  ;;  %v995_v44 = vmul.f32 %v979_v32, %v963_v39 }
 0x193   :  { %v1271_v45 = vpop.eup %1270 }
 0x194   :  { %1049 = vst.msk [vmem:[%s1916_s6 + $0x18] sm:$0xff] %vm27_vm1, %v1032_v43  ;;  %v932_v48 = vmul.f32 0.6931472, %v1271_v45  ;;  %v1043_v50 = vsub.f32 %v995_v44, %v1027_v42 }
 0x195   :  { %v962_v54 = vld [vmem:[#allocation3 + $0x68] sm:$0xff] }
 0x196   :  { %v948_v20 = vadd.f32 14.285714, %v932_v48  ;;  %1060 = vst.msk [vmem:[%s1916_s6 + $0x70] sm:$0xff] %vm27_vm1, %v1043_v50  ;;  %v994_v19 = vmul.f32 %v978_v47, %v962_v54 }
 0x198   :  { %v1028_v56 = vmul.f32 %v1012_v51, %v948_v20  ;;  %v1042_v58 = vsub.f32 %v994_v19, %v1026_v55 }
 0x19a   :  { %v1044_v37 = vsub.f32 %v996_v57, %v1028_v56  ;;  %1059 = vst.msk [vmem:[%s1916_s6 + $0x68] sm:$0xff] %vm27_vm1, %v1042_v58 }
 0x19c   :  { %1061 = vst.msk [vmem:[%s1916_s6 + $0x78] sm:$0xff] %vm27_vm1, %v1044_v37 }

</bundles_post_ra>
